<compile_context>
chip_gen: v7x
topology: tpu7x:2x2x1
jax: 0.10.0
libtpu: 0.0.40
codegen_flags: <defaults>
</compile_context>

<pallas_src>
import math

import jax
import jax.numpy as jnp
from jax.experimental import pallas as pl
from jax.experimental.pallas import tpu as pltpu


def _round_up(x, m):
    return (x + m - 1) // m * m


def _ceil_div(a, b):
    return -(-a // b)


# ----------------------------------------------------------------------------
# Init-time parameter setup (equivalent of laplacian_embeddings in __init__).
# TODO(synk): dense symmetric eigendecomposition has no Pallas equivalent; it
# runs once at init time in plain JAX (XLA), exactly like the PyTorch module.
# ----------------------------------------------------------------------------
def laplacian_embeddings_jax(k, n_nodes, edges, u_dist, sigma):
    w = jnp.exp(-(u_dist ** 2) / (sigma ** 2)).astype(jnp.float32)
    adj = jnp.zeros((n_nodes, n_nodes), jnp.float32).at[edges[:, 0], edges[:, 1]].set(w)
    diagonals = adj.sum(0)
    laplacian = jnp.diag(diagonals) - adj
    # eigh -> ascending eigenvalues; the k smallest are the first k columns.
    _, Q = jnp.linalg.eigh(laplacian)
    return Q[:, :k].astype(jnp.float32)


# ----------------------------------------------------------------------------
# Node-independent temporal sin/cos table (hoisted out of the kernel).
# Same pow-based frequencies and sin/cos interleave as the PyTorch module.
# ----------------------------------------------------------------------------
def temporal_table(t_list_flat, half_t, half_tid, half_diw):
    def pos_emb(vals, half):
        mult = jnp.power(10000.0, jnp.arange(half, dtype=jnp.float32) / half)
        ang = vals[:, None] / mult                                   # (BT, half)
        # interleave: [sin0, cos0, sin1, cos1, ...]
        return jnp.stack([jnp.sin(ang), jnp.cos(ang)], axis=-1).reshape(
            vals.shape[0], 2 * half)

    t_val = t_list_flat.astype(jnp.float32)
    tid_val = (t_list_flat % (12 * 24)).astype(jnp.float32)
    diw_val = ((t_list_flat // (12 * 24)) % 7).astype(jnp.float32)
    return jnp.concatenate(
        [pos_emb(t_val, half_t), pos_emb(tid_val, half_tid), pos_emb(diw_val, half_diw)],
        axis=-1,
    )


# ----------------------------------------------------------------------------
# Pallas kernel + wrapper
# ----------------------------------------------------------------------------
def make_st_embedding(n_nodes, s_dim, half_t_dim, half_tid_dim, half_diw_dim,
                      max_tile_rows=1024):
    t_total = 2 * (half_t_dim + half_tid_dim + half_diw_dim)
    D = s_dim + t_total
    nD = n_nodes * D
    # lhs columns: [temporal hi | temporal lo | 1.0 | 1.0 | zero pad]
    K = 2 * t_total + 2
    K_pad = _round_up(K, 16)

    def kernel(lhs_ref, place_ref, out_ref):
        # lhs_ref  : (TB, K_pad)  bf16 — per-row temporal hi/lo values + ones
        # place_ref: (K_pad, nD)  bf16 — 0/1 placement + spatial hi/lo rows (resident)
        # out_ref  : (TB, nD)     f32  — lane-dense output tile
        # One small bf16 MXU matmul per tile, f32 accumulation, dense store.
        out_ref[...] = jnp.dot(lhs_ref[...], place_ref[...],
                               preferred_element_type=jnp.float32)

    def build_placement(spatial_emb):
        # Temporal placement: column j*D + s_dim + k gets feature k of node j,
        # from both the hi row (k) and the lo row (t_total + k).  0/1 is exact
        # in bf16.
        t_cols = (jnp.arange(n_nodes)[:, None] * D + s_dim
                  + jnp.arange(t_total)[None, :]).reshape(-1)
        t_rows = jnp.tile(jnp.arange(t_total), n_nodes)
        p = jnp.zeros((K_pad, nD), jnp.float32)
        p = p.at[t_rows, t_cols].set(1.0)            # temporal hi
        p = p.at[t_rows + t_total, t_cols].set(1.0)  # temporal lo
        # Spatial embedding folded in as two bf16 hi/lo rows driven by the two
        # constant 1.0 lhs columns (removes the separate broadcast add while
        # keeping ~1e-5-level accuracy vs f32).
        s_hi = spatial_emb.astype(jnp.bfloat16).astype(jnp.float32)
        s_lo = spatial_emb - s_hi
        s_cols = (jnp.arange(n_nodes)[:, None] * D
                  + jnp.arange(s_dim)[None, :]).reshape(-1)
        p = p.at[2 * t_total, s_cols].set(s_hi.reshape(-1))
        p = p.at[2 * t_total + 1, s_cols].set(s_lo.reshape(-1))
        return p.astype(jnp.bfloat16)

    def choose_tiling(bt):
        bt16 = _round_up(bt, 16)              # bf16 sublane packing
        cap = max_tile_rows
        if bt16 >= 8 * max_tile_rows:         # very large bt -> allow 2048-row tiles
            cap = 2 * max_tile_rows
        if bt16 <= 16:
            return bt16, 1                    # too small for a 2-step grid
        n_steps = max(2, _ceil_div(bt16, cap))   # >= 2 steps for megacore
        if n_steps > 2 and n_steps % 2 == 1:
            n_steps += 1                          # balanced split across 2 TCs
        tile = _round_up(_ceil_div(bt16, n_steps), 16)  # minimal padding waste
        return tile, n_steps

    def forward(t_list, spatial_emb):
        B, T = t_list.shape
        bt = B * T
        tile_rows, n_steps = choose_tiling(bt)
        bt_pad = tile_rows * n_steps

        # (b,t)-dependent temporal table, computed once outside the kernel.
        temp = temporal_table(t_list.reshape(-1),
                              half_t_dim, half_tid_dim, half_diw_dim)  # (bt, t_total) f32
        # bf16 hi/lo split -> single-pass bf16 MXU matmul stays ~exact.
        t_hi = temp.astype(jnp.bfloat16).astype(jnp.float32)
        t_lo = temp - t_hi
        ones = jnp.ones((bt, 2), jnp.float32)
        lhs = jnp.concatenate([t_hi, t_lo, ones], axis=-1)             # (bt, K)
        lhs = jnp.pad(lhs, ((0, bt_pad - bt), (0, K_pad - K)))
        lhs = lhs.astype(jnp.bfloat16)

        placement = build_placement(spatial_emb)                        # (K_pad, nD) bf16

        grid_spec = pltpu.PrefetchScalarGridSpec(
            num_scalar_prefetch=0,
            grid=(n_steps,),
            in_specs=[
                pl.BlockSpec((tile_rows, K_pad), lambda i: (i, 0)),
                pl.BlockSpec((K_pad, nD), lambda i: (0, 0)),   # resident constant
            ],
            out_specs=pl.BlockSpec((tile_rows, nD), lambda i: (i, 0)),
        )
        out_flat = pl.pallas_call(
            kernel,
            out_shape=jax.ShapeDtypeStruct((bt_pad, nD), jnp.float32),
            grid_spec=grid_spec,
            compiler_params=pltpu.CompilerParams(
                dimension_semantics=("parallel",),   # megacore split on v7x
            ),
        )(lhs, placement)

        # Free reshape back to the module's (B, T, n_nodes, D) layout.
        return out_flat[:bt].reshape(B, T, n_nodes, D)

    return forward


# ----------------------------------------------------------------------------
# Pure-JAX reference (mirrors the PyTorch forward) for a correctness check
# ----------------------------------------------------------------------------
def reference_forward(t_list, spatial_emb, half_t, half_tid, half_diw):
    B, T = t_list.shape
    N, s_dim = spatial_emb.shape
    s_emb = jnp.broadcast_to(spatial_emb[None, None], (B, T, N, s_dim))

    def pos_emb(vals, half):
        mult = jnp.power(10000.0, jnp.arange(half) / half)
        ang = vals[..., None] / mult  # (B, T, half)
        emb = jnp.zeros((B, T, 2 * half), jnp.float32)
        emb = emb.at[..., 0::2].set(jnp.sin(ang))
        emb = emb.at[..., 1::2].set(jnp.cos(ang))
        return emb

    t_val = t_list.astype(jnp.float32)
    tid_val = (t_list % (12 * 24)).astype(jnp.float32)
    diw_val = ((t_list // (12 * 24)) % 7).astype(jnp.float32)
    t_emb = jnp.concatenate(
        [pos_emb(t_val, half_t), pos_emb(tid_val, half_tid), pos_emb(diw_val, half_diw)],
        axis=-1,
    )
    t_emb = jnp.broadcast_to(t_emb[:, :, None, :], (B, T, N, t_emb.shape[-1]))
    return jnp.concatenate([s_emb, t_emb], axis=-1)


# ----------------------------------------------------------------------------
if __name__ == "__main__":
    key = jax.random.PRNGKey(0)

    # Module hyper-params (small, consistent with the module's defaults)
    n_nodes = 16
    s_dim = 8
    t_dim, tid_dim, diw_dim = 10, 10, 2
    half_t, half_tid, half_diw = t_dim // 2, tid_dim // 2, diw_dim // 2
    B, T = 2, 8

    # Deterministic graph: bidirectional ring over n_nodes
    fwd_edges = jnp.stack(
        [jnp.arange(n_nodes), (jnp.arange(n_nodes) + 1) % n_nodes], axis=1
    )
    edges = jnp.concatenate([fwd_edges, fwd_edges[:, ::-1]], axis=0).astype(jnp.int32)
    k_d, key = jax.random.split(key)
    u_dist = jax.random.uniform(k_d, (edges.shape[0],), jnp.float32, 0.5, 2.0)

    # sigma = std(u_dist) / 50   (torch.std is unbiased -> ddof=1)
    sigma = jnp.std(u_dist, ddof=1) / 50.0

    spatial_emb = laplacian_embeddings_jax(s_dim, n_nodes, edges, u_dist, sigma)

    # Timestamps (B, T): 5-minute indices within a couple of weeks
    k_t, key = jax.random.split(key)
    t_list = jax.random.randint(k_t, (B, T), 0, 2 * 7 * 12 * 24, dtype=jnp.int32)

    forward = jax.jit(make_st_embedding(n_nodes, s_dim, half_t, half_tid, half_diw))
    out = forward(t_list, spatial_emb)
    out = jax.block_until_ready(out)

    ref = reference_forward(t_list, spatial_emb, half_t, half_tid, half_diw)
    assert out.shape == (B, T, n_nodes, s_dim + t_dim + tid_dim + diw_dim), out.shape
    assert jnp.allclose(out, ref, atol=1e-4, rtol=1e-4), float(jnp.max(jnp.abs(out - ref)))

    print("KERNEL_OK")
</pallas_src>

<mosaic_0001>
module attributes {stable_mosaic.version = 11 : i64} {
  func.func @kernel(%arg0: i32, %arg1: memref<16x48xbf16, #tpu.memory_space<vmem>>, %arg2: memref<48x480xbf16, #tpu.memory_space<vmem>>, %arg3: memref<16x480xf32, #tpu.memory_space<vmem>>) attributes {dimension_semantics = [#tpu.dimension_semantics<parallel>], iteration_bounds = array<i64: 1>, scalar_prefetch = 0 : i64, scratch_operands = 0 : i64, tpu.core_type = #tpu.core_type<tc>, window_params = [{transform_indices = @transform_0, window_bounds = array<i64: 16, 48>}, {pipeline_mode = #tpu.pipeline_mode<synchronous>, transform_indices = @transform_1, window_bounds = array<i64: 48, 480>}, {transform_indices = @transform_2, window_bounds = array<i64: 16, 480>}]} {
    %c0 = arith.constant 0 : index
    %c0_0 = arith.constant 0 : index
    %0 = vector.load %arg1[%c0, %c0_0] : memref<16x48xbf16, #tpu.memory_space<vmem>>, vector<16x48xbf16>
    %c0_1 = arith.constant 0 : index
    %c0_2 = arith.constant 0 : index
    %1 = vector.load %arg2[%c0_1, %c0_2] : memref<48x480xbf16, #tpu.memory_space<vmem>>, vector<48x480xbf16>
    %cst = arith.constant dense<0.000000e+00> : vector<16x480xf32>
    %2 = tpu.matmul %0, %1, %cst {dimension_numbers = #tpu.dot_dimension_numbers<[1], [0], [0], [1], [0, 0, 1, 1], [], []>} : vector<16x48xbf16>, vector<48x480xbf16>, vector<16x480xf32> -> vector<16x480xf32>
    %c0_3 = arith.constant 0 : index
    %c0_4 = arith.constant 0 : index
    %3 = vector.load %arg3[%c0_3, %c0_4] : memref<16x480xf32, #tpu.memory_space<vmem>>, vector<16x480xf32>
    tpu.vector_store %arg3[%c0_3, %c0_4], %2 {strides = array<i32>} : memref<16x480xf32, #tpu.memory_space<vmem>>, vector<16x480xf32>,
    return
  }
  func.func @transform_0(%arg0: i32) -> (i32, i32) {
    %c0_i32 = arith.constant 0 : i32
    %c0_i32_0 = arith.constant 0 : i32
    return %arg0, %c0_i32 : i32, i32
  }
  func.func @transform_1(%arg0: i32) -> (i32, i32) {
    %c0_i32 = arith.constant 0 : i32
    %c0_i32_0 = arith.constant 0 : i32
    %c0_i32_1 = arith.constant 0 : i32
    return %c0_i32, %c0_i32_0 : i32, i32
  }
  func.func @transform_2(%arg0: i32) -> (i32, i32) {
    %c0_i32 = arith.constant 0 : i32
    %c0_i32_0 = arith.constant 0 : i32
    return %arg0, %c0_i32 : i32, i32
  }
}

</mosaic_0001>

<bundles_post_ra>
// kernel: cos.25
= control target key start
LH: loop header
LB: loop body
LE: loop exit
PB: predicated region body
PF: predicated region fallthrough
CT: control target
= control target key end

     0   :  { %v125_v12 = vmov 683565275   ;;  %v126_v14 = vmov 2475754826   ;;  %v127_v16 = vmov 2131351028   ;;  %s168_s0 = inlined_call_operand.vmem [shape: f32[16,1,1], index: 0, kind: input, shape index: {}]   ;;  %s169_s1 = inlined_call_operand.vmem [shape: f32[16,1,1], index: 1, kind: output, shape index: {}]  }
   0x1   :  { %v144_v0 = vld [vmem:[%s168_s0] sm:$0x1]  ;;  %v128_v18 = vmov 2102212464   ;;  %v129_v20 = vmov 920167782  }
   0x2   :  { %v6_v1 = vand.u32 2139095040, %v144_v0  ;;  %v3_v3 = vand.u32 2147483647, %v144_v0  ;;  %v130_v27 = vmov 1326507024   ;;  %vm5_vm7 = vcmp.lt.s32.totalorder %v144_v0, 0 }
   0x3   :  { %vm95_vm12 = vweird.f32 %v144_v0 }
   0x4   :  { %v7_v2 = vshrl.u32 %v6_v1, 23  ;;  %v10_v6 = vand.u32 8388607, %v3_v3  ;;  %vm4_vm8 = vcmp.le.f32.partialorder %v3_v3, 0.7853982 }
   0x6   :  { %v107_v4 = vadd.s32 4294967169, %v7_v2  ;;  %v11_v9 = vor.u32 8388608, %v10_v6 }
   0x8   :  { %v13_v5 = vadd.s32 1, %v107_v4  ;;  %v51_v29 = vshll.u32 %v11_v9, 8 }
   0xa   :  { %vm14_vm0 = vcmp.gt.s32.totalorder %v13_v5, 0 }
   0xb   :  { %v15_v7 = vsel %vm14_vm0, %v13_v5, 0 }
   0xc   :  { %v17_v8 = vand.u32 31, %v15_v7  ;;  %v16_v10 = vshrl.u32 %v15_v7, 5 }
   0xe   :  { %v18_v11 = vsub.s32 32, %v17_v8  ;;  %v20_v13 = vshll.u32 %v125_v12, %v17_v8  ;;  %v23_v15 = vshll.u32 %v126_v14, %v17_v8  ;;  %v26_v17 = vshll.u32 %v127_v16, %v17_v8 }
   0xf   :  { %v29_v19 = vshll.u32 %v128_v18, %v17_v8  ;;  %v32_v21 = vshll.u32 %v129_v20, %v17_v8  ;;  %vm35_vm1 = vcmp.lt.s32.totalorder %v16_v10, 1  ;;  %vm38_vm2 = vcmp.lt.s32.totalorder %v16_v10, 4 }
  0x10   :  { %v19_v22 = vshrl.u32 %v125_v12, %v18_v11  ;;  %v21_v23 = vshrl.u32 %v126_v14, %v18_v11  ;;  %v24_v24 = vshrl.u32 %v127_v16, %v18_v11  ;;  %v27_v25 = vshrl.u32 %v128_v18, %v18_v11 }
  0x11   :  { %v30_v26 = vshrl.u32 %v129_v20, %v18_v11  ;;  %v33_v28 = vshrl.u32 %v130_v27, %v18_v11  ;;  %vm36_vm3 = vcmp.lt.s32.totalorder %v16_v10, 2  ;;  %vm37_vm4 = vcmp.lt.s32.totalorder %v16_v10, 3 }
  0x12   :  { %v22_v30 = vor.u32 %v21_v23, %v20_v13  ;;  %v25_v31 = vor.u32 %v24_v24, %v23_v15  ;;  %v28_v32 = vor.u32 %v27_v25, %v26_v17 }
  0x13   :  { %v31_v33 = vor.u32 %v30_v26, %v29_v19  ;;  %v34_v34 = vor.u32 %v33_v28, %v32_v21 }
  0x14   :  { %v39_v35 = vsel %vm35_vm1, %v19_v22, %v22_v30  ;;  %v40_v36 = vsel %vm38_vm2, %v28_v32, 2102212464  ;;  %v43_v37 = vsel %vm35_vm1, %v22_v30, %v25_v31  ;;  %v47_v38 = vsel %vm35_vm1, %v25_v31, %v28_v32 }
  0x15   :  { %v41_v39 = vsel %vm37_vm4, %v25_v31, %v40_v36  ;;  %v44_v40 = vsel %vm38_vm2, %v31_v33, 920167782  ;;  %v48_v41 = vsel %vm38_vm2, %v34_v34, 1326507024 }
  0x16   :  { %v45_v42 = vsel %vm37_vm4, %v28_v32, %v44_v40  ;;  %v49_v43 = vsel %vm37_vm4, %v31_v33, %v48_v41  ;;  %v42_v44 = vsel %vm36_vm3, %v39_v35, %v41_v39 }
  0x17   :  { %v46_v45 = vsel %vm36_vm3, %v43_v37, %v45_v42  ;;  %v50_v46 = vsel %vm36_vm3, %v47_v38, %v49_v43  ;;  %v58_v51 = vmul.u32 %v51_v29, %v42_v44 }
  0x18   :  { %v150_v47 = vmul.u32.u64.low %v51_v29, %v50_v46  ;;  %v151_v48 = vmul.u32.u64.high %v51_v29, %v50_v46, %v150_v47  ;;  %v153_v49 = vmul.u32.u64.low %v51_v29, %v46_v45  ;;  %v154_v50 = vmul.u32.u64.high %v51_v29, %v46_v45, %v153_v49 }
  0x1a   :  { %vm60_vm5 = vc.u32 %v151_v48, %v153_v49  ;;  %v61_v52 = vadd.s32 1, %v154_v50  ;;  %v59_v63 = vadd.s32 %v153_v49, %v151_v48 }
  0x1c   :  { %v62_v53 = vsel %vm60_vm5, %v61_v52, %v154_v50 }
  0x1d   :  { %v63_v54 = vadd.s32 %v62_v53, %v58_v51 }
  0x1f   :  { %v64_v55 = vadd.s32 536870912, %v63_v54 }
  0x21   :  { %v65_v56 = vshrl.u32 %v64_v55, 30 }
  0x23   :  { %v66_v57 = vshll.u32 %v65_v56, 30  ;;  %v89_v14 = vsub.s32 4, %v65_v56 }
  0x25   :  { %v67_v58 = vsub.s32 %v63_v54, %v66_v57  ;;  %v90_v17 = vsel %vm5_vm7, %v89_v14, %v65_v56 }
  0x26   :  { %v92_v18 = vsel %vm4_vm8, 0, %v90_v17 }
  0x27   :  { %v69_v59 = vsub.s32 0, %v67_v58  ;;  %v96_v19 = vand.u32 3, %v92_v18 }
  0x29   :  { %v108_v60 = vmin.u32 %v69_v59, %v67_v58  ;;  %vm101_vm9 = vcmp.eq.s32.totalorder %v96_v19, 2  ;;  %vm98_vm10 = vcmp.eq.s32.totalorder %v96_v19, 0  ;;  %vm97_vm11 = vcmp.lt.s32.totalorder %v96_v19, 2 }
  0x2b   :  { %v71_v61 = vclz %v108_v60 }
  0x2d   :  { %v109_v62 = vadd.s32 4294967294, %v71_v61 }
  0x2f   :  { %vm110_vm6 = vcmp.lt.s32.totalorder %v109_v62, 0 }
  0x30   :  { %v74_v1 = vsel %vm110_vm6, 0, %v109_v62 }
  0x31   :  { %v75_v2 = vsub.s32 32, %v74_v1  ;;  %v76_v4 = vshll.u32 %v67_v58, %v74_v1  ;;  %v79_v5 = vsub.s32 4294967266, %v74_v1 }
  0x33   :  { %v77_v6 = vshrl.u32 %v59_v63, %v75_v2  ;;  %v80_v7 = vadd.s32 127, %v79_v5 }
  0x35   :  { %v78_v8 = vor.u32 %v77_v6, %v76_v4  ;;  %v81_v9 = vshll.u32 %v80_v7, 23 }
  0x37   :  { %v82_v10 = vor.u32 4788187, %v81_v9  ;;  %v85_v11 = vcvt.s32.f32 %v78_v8 }
  0x39   :  { %v83_v12 = vand.u32 2147483647, %v82_v10 }
  0x3b   :  { %v86_v13 = vmul.f32 %v85_v11, %v83_v12 }
  0x3d   :  { %v87_v3 = vxor.u32 2147483648, %v86_v13 }
  0x3f   :  { %v88_v15 = vsel %vm5_vm7, %v87_v3, %v86_v13 }
  0x40   :  { %v91_v16 = vsel %vm4_vm8, %v144_v0, %v88_v15 }
  0x41   :  { %121 = vcosq.f32 %v91_v16 }
  0x42   :  { %123 = vsinq.f32 %v91_v16 }
  0x4b   :  { %v122_v20 = vpop.eup %121 }
  0x4c   :  { %v124_v21 = vpop.eup %123  ;;  %v102_v22 = vxor.u32 2147483648, %v122_v20 }
  0x4d   :  { %v99_v23 = vxor.u32 2147483648, %v124_v21 }
  0x4e   :  { %v103_v0 = vsel %vm101_vm9, %v102_v22, %v124_v21 }
  0x4f   :  { %v100_v24 = vsel %vm98_vm10, %v122_v20, %v99_v23 }
  0x50   :  { %v104_v25 = vsel %vm97_vm11, %v100_v24, %v103_v0 }
  0x51   :  { %v105_v26 = vsel %vm95_vm12, nan, %v104_v25 }
  0x52   :  { %106 = vst [vmem:[%s169_s1] sm:$0x1] %v105_v26 }

// kernel: forward.1
= control target key start
LH: loop header
LB: loop body
LE: loop exit
PB: predicated region body
PF: predicated region fallthrough
CT: control target
= control target key end

     0   :  { %v229_v1 = vmov 0   ;;  %vm91_vm0 = vcmask 392192   ;;  %vm184_vm1 = vcmask 785408   ;;  %s310_s1 = inlined_call_operand.vmem [shape: bf16[48,480], index: 1, kind: input, shape index: {}]   ;;  %s311_s0 = inlined_call_operand.vmem [shape: bf16[16,48], index: 0, kind: input, shape index: {}]   ;;  %s312_s2 = inlined_call_operand.vmem [shape: f32[16,480], index: 2, kind: output, shape index: {}]  }
   0x1   :  { %v210_v0 = vld [vmem:[%s310_s1 + $0x4] ss:$16 sps:$4 sm:$0xff]   ;;  %127 = vmatprep.mubr.bf16.mxu0 %v229_v1  ;;  %170 = vmatprep.mubr.bf16.mxu1 %v229_v1  ;;  %v212_v2 = vld [vmem:[%s310_s1 + $0xc] ss:$16 sps:$4 sm:$0xff]   ;;  %v214_v3 = vld [vmem:[%s310_s1] ss:$16 sps:$4 sm:$0xff]  }
   0x2   :  { %95 = vmatprep.subr.bf16.mxu0 %v210_v0  ;;  %v215_v4 = vld [vmem:[%s310_s1 + $0x8] ss:$16 sps:$4 sm:$0xff]   ;;  %138 = vmatprep.subr.bf16.mxu1 %v212_v2  ;;  %v216_v5 = vld [vmem:[%s310_s1 + $0x24] ss:$16 sps:$4 sm:$0xff]   ;;  %v218_v6 = vld [vmem:[%s310_s1 + $0x2c] ss:$16 sps:$4 sm:$0xff]  }
   0x3   :  { %96 = vmatpush1.bf16.msra.mxu0 %v214_v3  ;;  %139 = vmatpush1.bf16.msra.mxu1 %v215_v4  ;;  %v220_v7 = vld [vmem:[%s310_s1 + $0x20] ss:$16 sps:$4 sm:$0xff]   ;;  %v221_v8 = vld [vmem:[%s310_s1 + $0x28] ss:$16 sps:$4 sm:$0xff]   ;;  %v222_v9 = vld [vmem:[%s310_s1 + $0x44] ss:$16 sps:$4 sm:$0xff]  }
   0x4   :  { %97 = vmatprep.subr.bf16.mxu0 %v216_v5  ;;  %140 = vmatprep.subr.bf16.mxu1 %v218_v6  ;;  %v224_v10 = vld [vmem:[%s310_s1 + $0x4c] ss:$16 sps:$4 sm:$0xff]   ;;  %v226_v11 = vld [vmem:[%s310_s1 + $0x40] ss:$16 sps:$4 sm:$0xff]   ;;  %v227_v12 = vld [vmem:[%s310_s1 + $0x48] ss:$16 sps:$4 sm:$0xff]  }
   0x5   :  { %v228_v13 = vld [vmem:[%s311_s0] sm:$0xff]  }
   0x7   :  { %98 = vmatpush1.bf16.msra.mxu0 %v220_v7  ;;  %141 = vmatpush1.bf16.msra.mxu1 %v221_v8 }
   0x8   :  { %99 = vmatprep.subr.bf16.mxu0 %v222_v9  ;;  %142 = vmatprep.subr.bf16.mxu1 %v224_v10 }
   0xb   :  { %100 = vmatpush1.bf16.msra.mxu0 %v226_v11  ;;  %143 = vmatpush1.bf16.msra.mxu1 %v227_v12 }
   0xe   :  { %207 = vmatmul.mubr.msk.bf16.vlgmr.msra.gmra.mrb[0].mxu0 %vm91_vm0, %v228_v13  ;;  %208 = vmatmul.mubr.msk.bf16.vlgmr.msra.gmra.mrb[0].mxu1 %vm91_vm0, %v228_v13 }
  0xe1   :  { %v129_v14 = vpop.f32.mrb[0].mxu0  ;;  %v172_v15 = vpop.f32.mrb[0].mxu1 }
  0xe2   :  { %181 = vst [vmem:[%s312_s2] sm:$0xff] %v129_v14  ;;  %183 = vst [vmem:[%s312_s2 + $0x10] sm:$0xff] %v172_v15  ;;  %v131_v16 = vpop.f32.mrb[1].mxu0  ;;  %v174_v17 = vpop.f32.mrb[1].mxu1 }
  0xe3   :  { %182 = vst [vmem:[%s312_s2 + $0x8] sm:$0xff] %v131_v16  ;;  %185 = vst.msk [vmem:[%s312_s2 + $0x18] sm:$0xff] %vm184_vm1, %v174_v17  ;;  %v133_v18 = vpop.f32.mrb[2].mxu0  ;;  %v176_v19 = vpop.f32.mrb[2].mxu1 }
  0xe4   :  { %186 = vst [vmem:[%s312_s2 + $0x20] sm:$0xff] %v133_v18  ;;  %188 = vst [vmem:[%s312_s2 + $0x30] sm:$0xff] %v176_v19  ;;  %v135_v20 = vpop.f32.mrb[3].mxu0  ;;  %v178_v21 = vpop.f32.mrb[3].mxu1 }
  0xe5   :  { %187 = vst [vmem:[%s312_s2 + $0x28] sm:$0xff] %v135_v20  ;;  %189 = vst.msk [vmem:[%s312_s2 + $0x38] sm:$0xff] %vm184_vm1, %v178_v21 }

</bundles_post_ra>
